<compile_context>
chip_gen: v7x
topology: tpu7x:2x2x1
jax: 0.10.0
libtpu: 0.0.40
codegen_flags: <defaults>
</compile_context>

<pallas_src>
import functools

import jax
import jax.numpy as jnp
from jax.experimental import pallas as pl
from jax.experimental.pallas import tpu as pltpu

_NEG_BIG = -1e30  # pad value for the action-bias lanes beyond action_dim


def _round_up(x, m):
    return ((x + m - 1) // m) * m


def _actor_kernel(inv_tau, dims,
                  state_ref, gum_ref,
                  w1_ref, w2_ref, w3_ref, w4_ref, wa_ref, vec_ref,
                  act_ref):
    """One batch block of the full actor forward pass."""
    fc1, fc2, fc3, fc4, apad = dims
    eps_ln = 1e-5

    # Packed per-layer vectors (f32): rows [b1, g1, be1, b2, g2, be2, b3, b4, ba],
    # each zero-padded to max width (ba padded with -1e30 up to `apad` lanes).
    vec = vec_ref[...]
    b1, g1, be1 = vec[0:1, :fc1], vec[1:2, :fc1], vec[2:3, :fc1]
    b2, g2, be2 = vec[3:4, :fc2], vec[4:5, :fc2], vec[5:6, :fc2]
    b3 = vec[6:7, :fc3]
    b4 = vec[7:8, :fc4]
    ba = vec[8:9, :apad]

    def layernorm(h, g, be):
        mu = jnp.mean(h, axis=-1, keepdims=True)
        d = h - mu
        var = jnp.mean(d * d, axis=-1, keepdims=True)   # two-pass: no cancellation
        return d * jax.lax.rsqrt(var + eps_ln) * g + be

    def dot_bf16(h, w_ref):
        # bf16 operands on the MXU, f32 accumulation.
        return jnp.dot(h.astype(w_ref.dtype), w_ref[...],
                       preferred_element_type=jnp.float32)

    x = state_ref[...]                                   # (bm, state_dim) bf16

    # fc1 -> ln1 -> relu
    h = dot_bf16(x, w1_ref) + b1
    h = jnp.maximum(layernorm(h, g1, be1), 0.0)
    # fc2 -> ln2 -> relu
    h = dot_bf16(h, w2_ref) + b2
    h = jnp.maximum(layernorm(h, g2, be2), 0.0)
    # fc3 -> relu
    h = jnp.maximum(dot_bf16(h, w3_ref) + b3, 0.0)
    # fc4 -> relu
    h = jnp.maximum(dot_bf16(h, w4_ref) + b4, 0.0)

    # action head: lane-dense (bm, 128+) logits; pad lanes sit at -1e30.
    logits = dot_bf16(h, wa_ref) + ba

    # gumbel-softmax (soft, hard=False); noise pre-sampled, pad lanes carry 0.
    z = (logits + gum_ref[...]) * inv_tau
    z = z - jnp.max(z, axis=-1, keepdims=True)
    e = jnp.exp(z)                                       # pad lanes underflow to 0
    # TODO(synk): on a Mosaic-only build, pl.reciprocal(..., approx=True) moves the
    # divide onto the EUP slot; plain division kept for interpret-mode portability.
    act_ref[...] = e / jnp.sum(e, axis=-1, keepdims=True)


def actor_forward(state, params, key, *, act_tau=1.0, block_b=1024):
    """Runs the actor forward pass.

    state : (B, ...) float — flattened to (B, state_dim) (nn.Flatten).
    key   : jax PRNG key used for the Gumbel noise.
    Returns (action, gumbels): action (B, action_dim) f32, gumbels (B, action_dim) f32.
    """
    B = state.shape[0]
    x2 = state.reshape(B, -1)
    state_dim = x2.shape[1]
    assert state_dim == params["w1"].shape[0]

    fc1 = params["w1"].shape[1]
    fc2 = params["w2"].shape[1]
    fc3 = params["w3"].shape[1]
    fc4 = params["w4"].shape[1]
    adim = params["wa"].shape[1]
    apad = max(128, _round_up(adim, 128))        # lane-dense action head
    maxw = max(fc1, fc2, fc3, fc4, apad)

    cdt = jnp.bfloat16                            # MXU/DMA dtype for weights & acts
    # TODO(synk): on v6e/v7x the elementwise chain could also run in bf16; kept f32
    # so the same kernel is optimal on v5e (no bf16 VPU/EUP there).

    # bf16 weights; action weight zero-padded to `apad` output lanes.
    w1 = params["w1"].astype(cdt)
    w2 = params["w2"].astype(cdt)
    w3 = params["w3"].astype(cdt)
    w4 = params["w4"].astype(cdt)
    wa = jnp.pad(params["wa"], ((0, 0), (0, apad - adim))).astype(cdt)
    # TODO(synk): for the tiny latency-bound config the five weights could be packed
    # into one zero-padded HBM buffer (single DMA descriptor) and static-sliced.

    def row(v):
        v = jnp.asarray(v, jnp.float32).reshape(1, -1)
        return jnp.pad(v, ((0, 0), (0, maxw - v.shape[1])))

    ba_row = jnp.concatenate(
        [jnp.asarray(params["ba"], jnp.float32).reshape(1, -1),
         jnp.full((1, apad - adim), _NEG_BIG, jnp.float32)], axis=1)
    ba_row = jnp.pad(ba_row, ((0, 0), (0, maxw - apad)))

    vec = jnp.concatenate(
        [row(params["b1"]), row(params["g1"]), row(params["be1"]),
         row(params["b2"]), row(params["g2"]), row(params["be2"]),
         row(params["b3"]), row(params["b4"]), ba_row], axis=0)   # (9, maxw) f32

    # Batch tiling: ensure >=2 grid steps whenever the batch allows it so the
    # "parallel" axis can use both TensorCores on v7x.
    target = _round_up(B, 8)
    if target > 8:
        target = _round_up((B + 1) // 2, 8)
    bm = max(8, min(block_b, target))
    b_pad = _round_up(B, bm)
    nb = b_pad // bm

    xs = x2.astype(cdt)
    if b_pad != B:
        xs = jnp.pad(xs, ((0, b_pad - B), (0, 0)))

    # Gumbel(0,1) noise sampled host-side (matches F.gumbel_softmax's noise law).
    # TODO(synk): real-TPU builds can sample this in-kernel via pltpu.prng_seed /
    # prng_random_bits; the pltpu PRNG primitives have no interpret/CPU lowering.
    gum = jax.random.gumbel(key, (B, adim), dtype=jnp.float32)
    gum_pad = jnp.pad(gum, ((0, b_pad - B), (0, apad - adim)))    # pad lanes = 0

    # VMEM budget: resident weights (single-buffered) + double-buffered streams.
    resident_bytes = sum(int(w.size) * w.dtype.itemsize for w in (w1, w2, w3, w4, wa))
    resident_bytes += int(vec.size) * vec.dtype.itemsize
    stream_bytes = 2 * bm * (state_dim * xs.dtype.itemsize + apad * 4 + apad * 4)
    vmem_limit = int(min(100 * 2**20,
                         max(32 * 2**20, 2 * (resident_bytes + stream_bytes))))

    kernel = functools.partial(_actor_kernel, float(1.0 / act_tau),
                               (fc1, fc2, fc3, fc4, apad))

    resident = pl.Buffered(1)   # constant block index -> no double buffering needed

    grid_spec = pltpu.PrefetchScalarGridSpec(
        num_scalar_prefetch=0,
        grid=(nb,),
        in_specs=[
            pl.BlockSpec((bm, state_dim), lambda i: (i, 0)),
            pl.BlockSpec((bm, apad), lambda i: (i, 0)),
            pl.BlockSpec(w1.shape, lambda i: (0, 0), pipeline_mode=resident),
            pl.BlockSpec(w2.shape, lambda i: (0, 0), pipeline_mode=resident),
            pl.BlockSpec(w3.shape, lambda i: (0, 0), pipeline_mode=resident),
            pl.BlockSpec(w4.shape, lambda i: (0, 0), pipeline_mode=resident),
            pl.BlockSpec(wa.shape, lambda i: (0, 0), pipeline_mode=resident),
            pl.BlockSpec(vec.shape, lambda i: (0, 0), pipeline_mode=resident),
        ],
        out_specs=pl.BlockSpec((bm, apad), lambda i: (i, 0)),
    )

    act = pl.pallas_call(
        kernel,
        out_shape=jax.ShapeDtypeStruct((b_pad, apad), jnp.float32),
        grid_spec=grid_spec,
        compiler_params=pltpu.CompilerParams(
            dimension_semantics=("parallel",),
            vmem_limit_bytes=vmem_limit),
    )(xs, gum_pad, w1, w2, w3, w4, wa, vec)

    return act[:B, :adim], gum


def init_params(key, state_dim, fc1, fc2, fc3, fc4, action_dim):
    """Xavier-normal weights, zero biases, LayerNorm gamma=1 / beta=0 (f32 master)."""
    def xavier(k, fan_in, fan_out):
        std = (2.0 / (fan_in + fan_out)) ** 0.5
        return std * jax.random.normal(k, (fan_in, fan_out), dtype=jnp.float32)

    ks = jax.random.split(key, 5)
    return {
        "w1": xavier(ks[0], state_dim, fc1), "b1": jnp.zeros((1, fc1), jnp.float32),
        "g1": jnp.ones((1, fc1), jnp.float32), "be1": jnp.zeros((1, fc1), jnp.float32),
        "w2": xavier(ks[1], fc1, fc2), "b2": jnp.zeros((1, fc2), jnp.float32),
        "g2": jnp.ones((1, fc2), jnp.float32), "be2": jnp.zeros((1, fc2), jnp.float32),
        "w3": xavier(ks[2], fc2, fc3), "b3": jnp.zeros((1, fc3), jnp.float32),
        "w4": xavier(ks[3], fc3, fc4), "b4": jnp.zeros((1, fc4), jnp.float32),
        "wa": xavier(ks[4], fc4, action_dim), "ba": jnp.zeros((1, action_dim), jnp.float32),
    }


def reference_forward(state, gumbels, params, act_tau=1.0, compute_dtype=jnp.bfloat16):
    """Pure-JAX reference mirroring the kernel's precision choices."""
    def dot(h, w):
        return jnp.dot(h.astype(compute_dtype), w.astype(compute_dtype),
                       preferred_element_type=jnp.float32)

    def ln(h, g, be):
        mu = jnp.mean(h, -1, keepdims=True)
        d = h - mu
        var = jnp.mean(d * d, -1, keepdims=True)
        return d * jax.lax.rsqrt(var + 1e-5) * g + be

    x = state.reshape(state.shape[0], -1).astype(jnp.float32)
    h = jax.nn.relu(ln(dot(x, params["w1"]) + params["b1"], params["g1"], params["be1"]))
    h = jax.nn.relu(ln(dot(h, params["w2"]) + params["b2"], params["g2"], params["be2"]))
    h = jax.nn.relu(dot(h, params["w3"]) + params["b3"])
    h = jax.nn.relu(dot(h, params["w4"]) + params["b4"])
    logits = dot(h, params["wa"]) + params["ba"]

    z = (logits + gumbels) * (1.0 / act_tau)
    z = z - jnp.max(z, axis=-1, keepdims=True)
    e = jnp.exp(z)
    return e / jnp.sum(e, axis=-1, keepdims=True)


if __name__ == "__main__":
    # Small shapes consistent with the module; state has extra dims to exercise
    # nn.Flatten: (B, 4, 8) -> (B, 32).
    B = 8
    state_shape = (B, 4, 8)
    state_dim = 4 * 8
    fc1_dim, fc2_dim, fc3_dim, fc4_dim = 64, 64, 32, 32
    action_dim = 16
    act_tau = 1.0

    key = jax.random.PRNGKey(0)
    k_param, k_state, k_gum = jax.random.split(key, 3)

    params = init_params(k_param, state_dim, fc1_dim, fc2_dim, fc3_dim, fc4_dim,
                         action_dim)
    state = jax.random.normal(k_state, state_shape, dtype=jnp.float32)

    act, gumbels = actor_forward(state, params, k_gum, act_tau=act_tau)
    act = jax.block_until_ready(act)
    gumbels = jax.block_until_ready(gumbels)

    # Verify against a pure-JAX reference using the same Gumbel noise.
    ref = reference_forward(state, gumbels, params, act_tau)
    assert act.shape == (B, action_dim), act.shape
    assert bool(jnp.all(jnp.isfinite(act))), "non-finite outputs"
    assert jnp.allclose(act, ref, atol=1e-3, rtol=1e-3), "mismatch vs reference"
    assert jnp.allclose(jnp.sum(act, axis=-1), 1.0, atol=1e-5), "rows must sum to 1"

    print("KERNEL_OK")
</pallas_src>

<mosaic_0001>
module attributes {stable_mosaic.version = 11 : i64} {
  func.func @_actor_kernel(%arg0: i32, %arg1: memref<8x32xbf16, #tpu.memory_space<vmem>>, %arg2: memref<8x128xf32, #tpu.memory_space<vmem>>, %arg3: memref<32x64xbf16, #tpu.memory_space<vmem>>, %arg4: memref<64x64xbf16, #tpu.memory_space<vmem>>, %arg5: memref<64x32xbf16, #tpu.memory_space<vmem>>, %arg6: memref<32x32xbf16, #tpu.memory_space<vmem>>, %arg7: memref<32x128xbf16, #tpu.memory_space<vmem>>, %arg8: memref<9x128xf32, #tpu.memory_space<vmem>>, %arg9: memref<8x128xf32, #tpu.memory_space<vmem>>) attributes {dimension_semantics = [#tpu.dimension_semantics<parallel>], iteration_bounds = array<i64: 1>, scalar_prefetch = 0 : i64, scratch_operands = 0 : i64, tpu.core_type = #tpu.core_type<tc>, window_params = [{transform_indices = @transform_0, window_bounds = array<i64: 8, 32>}, {transform_indices = @transform_1, window_bounds = array<i64: 8, 128>}, {pipeline_mode = #tpu.pipeline_mode<synchronous>, transform_indices = @transform_2, window_bounds = array<i64: 32, 64>}, {pipeline_mode = #tpu.pipeline_mode<synchronous>, transform_indices = @transform_3, window_bounds = array<i64: 64, 64>}, {pipeline_mode = #tpu.pipeline_mode<synchronous>, transform_indices = @transform_4, window_bounds = array<i64: 64, 32>}, {pipeline_mode = #tpu.pipeline_mode<synchronous>, transform_indices = @transform_5, window_bounds = array<i64: 32, 32>}, {pipeline_mode = #tpu.pipeline_mode<synchronous>, transform_indices = @transform_6, window_bounds = array<i64: 32, 128>}, {pipeline_mode = #tpu.pipeline_mode<synchronous>, transform_indices = @transform_7, window_bounds = array<i64: 9, 128>}, {transform_indices = @transform_8, window_bounds = array<i64: 8, 128>}]} {
    %c0 = arith.constant 0 : index
    %c0_0 = arith.constant 0 : index
    %0 = vector.load %arg8[%c0, %c0_0] : memref<9x128xf32, #tpu.memory_space<vmem>>, vector<9x128xf32>
    %1 = vector.extract_strided_slice %0 {offsets = [0, 0], sizes = [1, 64], strides = [1, 1]} : vector<9x128xf32> to vector<1x64xf32>
    %2 = vector.extract_strided_slice %0 {offsets = [1, 0], sizes = [1, 64], strides = [1, 1]} : vector<9x128xf32> to vector<1x64xf32>
    %3 = vector.extract_strided_slice %0 {offsets = [2, 0], sizes = [1, 64], strides = [1, 1]} : vector<9x128xf32> to vector<1x64xf32>
    %4 = vector.extract_strided_slice %0 {offsets = [3, 0], sizes = [1, 64], strides = [1, 1]} : vector<9x128xf32> to vector<1x64xf32>
    %5 = vector.extract_strided_slice %0 {offsets = [4, 0], sizes = [1, 64], strides = [1, 1]} : vector<9x128xf32> to vector<1x64xf32>
    %6 = vector.extract_strided_slice %0 {offsets = [5, 0], sizes = [1, 64], strides = [1, 1]} : vector<9x128xf32> to vector<1x64xf32>
    %7 = vector.extract_strided_slice %0 {offsets = [6, 0], sizes = [1, 32], strides = [1, 1]} : vector<9x128xf32> to vector<1x32xf32>
    %8 = vector.extract_strided_slice %0 {offsets = [7, 0], sizes = [1, 32], strides = [1, 1]} : vector<9x128xf32> to vector<1x32xf32>
    %9 = vector.extract_strided_slice %0 {offsets = [8, 0], sizes = [1, 128], strides = [1, 1]} : vector<9x128xf32> to vector<1x128xf32>
    %c0_1 = arith.constant 0 : index
    %c0_2 = arith.constant 0 : index
    %10 = vector.load %arg1[%c0_1, %c0_2] : memref<8x32xbf16, #tpu.memory_space<vmem>>, vector<8x32xbf16>
    %c0_3 = arith.constant 0 : index
    %c0_4 = arith.constant 0 : index
    %11 = vector.load %arg3[%c0_3, %c0_4] : memref<32x64xbf16, #tpu.memory_space<vmem>>, vector<32x64xbf16>
    %cst = arith.constant dense<0.000000e+00> : vector<8x64xf32>
    %12 = tpu.matmul %10, %11, %cst {dimension_numbers = #tpu.dot_dimension_numbers<[1], [0], [0], [1], [0, 0, 1, 1], [], []>} : vector<8x32xbf16>, vector<32x64xbf16>, vector<8x64xf32> -> vector<8x64xf32>
    %13 = vector.broadcast %1 : vector<1x64xf32> to vector<8x64xf32>
    %14 = arith.addf %12, %13 : vector<8x64xf32>
    %cst_5 = arith.constant dense<0.000000e+00> : vector<8xf32>
    %15 = vector.multi_reduction <add>, %14, %cst_5 [1] : vector<8x64xf32> to vector<8xf32>
    %16 = vector.shape_cast %15 : vector<8xf32> to vector<8x1xf32>
    %cst_6 = arith.constant 6.400000e+01 : f32
    %17 = vector.broadcast %cst_6 : f32 to vector<8x1xf32>
    %18 = arith.divf %16, %17 : vector<8x1xf32>
    %19 = vector.broadcast %18 : vector<8x1xf32> to vector<8x64xf32>
    %20 = arith.subf %14, %19 : vector<8x64xf32>
    %21 = arith.mulf %20, %20 : vector<8x64xf32>
    %cst_7 = arith.constant dense<0.000000e+00> : vector<8xf32>
    %22 = vector.multi_reduction <add>, %21, %cst_7 [1] : vector<8x64xf32> to vector<8xf32>
    %23 = vector.shape_cast %22 : vector<8xf32> to vector<8x1xf32>
    %cst_8 = arith.constant 6.400000e+01 : f32
    %24 = vector.broadcast %cst_8 : f32 to vector<8x1xf32>
    %25 = arith.divf %23, %24 : vector<8x1xf32>
    %cst_9 = arith.constant 9.99999974E-6 : f32
    %26 = vector.broadcast %cst_9 : f32 to vector<8x1xf32>
    %27 = arith.addf %25, %26 : vector<8x1xf32>
    %28 = math.rsqrt %27 : vector<8x1xf32>
    %29 = vector.broadcast %28 : vector<8x1xf32> to vector<8x64xf32>
    %30 = arith.mulf %20, %29 : vector<8x64xf32>
    %31 = vector.broadcast %2 : vector<1x64xf32> to vector<8x64xf32>
    %32 = arith.mulf %30, %31 : vector<8x64xf32>
    %33 = vector.broadcast %3 : vector<1x64xf32> to vector<8x64xf32>
    %34 = arith.addf %32, %33 : vector<8x64xf32>
    %cst_10 = arith.constant 0.000000e+00 : f32
    %35 = vector.broadcast %cst_10 : f32 to vector<8x64xf32>
    %36 = arith.maximumf %34, %35 : vector<8x64xf32>
    %37 = arith.truncf %36 : vector<8x64xf32> to vector<8x64xbf16>
    %c0_11 = arith.constant 0 : index
    %c0_12 = arith.constant 0 : index
    %38 = vector.load %arg4[%c0_11, %c0_12] : memref<64x64xbf16, #tpu.memory_space<vmem>>, vector<64x64xbf16>
    %cst_13 = arith.constant dense<0.000000e+00> : vector<8x64xf32>
    %39 = tpu.matmul %37, %38, %cst_13 {dimension_numbers = #tpu.dot_dimension_numbers<[1], [0], [0], [1], [0, 0, 1, 1], [], []>} : vector<8x64xbf16>, vector<64x64xbf16>, vector<8x64xf32> -> vector<8x64xf32>
    %40 = vector.broadcast %4 : vector<1x64xf32> to vector<8x64xf32>
    %41 = arith.addf %39, %40 : vector<8x64xf32>
    %cst_14 = arith.constant dense<0.000000e+00> : vector<8xf32>
    %42 = vector.multi_reduction <add>, %41, %cst_14 [1] : vector<8x64xf32> to vector<8xf32>
    %43 = vector.shape_cast %42 : vector<8xf32> to vector<8x1xf32>
    %cst_15 = arith.constant 6.400000e+01 : f32
    %44 = vector.broadcast %cst_15 : f32 to vector<8x1xf32>
    %45 = arith.divf %43, %44 : vector<8x1xf32>
    %46 = vector.broadcast %45 : vector<8x1xf32> to vector<8x64xf32>
    %47 = arith.subf %41, %46 : vector<8x64xf32>
    %48 = arith.mulf %47, %47 : vector<8x64xf32>
    %cst_16 = arith.constant dense<0.000000e+00> : vector<8xf32>
    %49 = vector.multi_reduction <add>, %48, %cst_16 [1] : vector<8x64xf32> to vector<8xf32>
    %50 = vector.shape_cast %49 : vector<8xf32> to vector<8x1xf32>
    %cst_17 = arith.constant 6.400000e+01 : f32
    %51 = vector.broadcast %cst_17 : f32 to vector<8x1xf32>
    %52 = arith.divf %50, %51 : vector<8x1xf32>
    %cst_18 = arith.constant 9.99999974E-6 : f32
    %53 = vector.broadcast %cst_18 : f32 to vector<8x1xf32>
    %54 = arith.addf %52, %53 : vector<8x1xf32>
    %55 = math.rsqrt %54 : vector<8x1xf32>
    %56 = vector.broadcast %55 : vector<8x1xf32> to vector<8x64xf32>
    %57 = arith.mulf %47, %56 : vector<8x64xf32>
    %58 = vector.broadcast %5 : vector<1x64xf32> to vector<8x64xf32>
    %59 = arith.mulf %57, %58 : vector<8x64xf32>
    %60 = vector.broadcast %6 : vector<1x64xf32> to vector<8x64xf32>
    %61 = arith.addf %59, %60 : vector<8x64xf32>
    %cst_19 = arith.constant 0.000000e+00 : f32
    %62 = vector.broadcast %cst_19 : f32 to vector<8x64xf32>
    %63 = arith.maximumf %61, %62 : vector<8x64xf32>
    %64 = arith.truncf %63 : vector<8x64xf32> to vector<8x64xbf16>
    %c0_20 = arith.constant 0 : index
    %c0_21 = arith.constant 0 : index
    %65 = vector.load %arg5[%c0_20, %c0_21] : memref<64x32xbf16, #tpu.memory_space<vmem>>, vector<64x32xbf16>
    %cst_22 = arith.constant dense<0.000000e+00> : vector<8x32xf32>
    %66 = tpu.matmul %64, %65, %cst_22 {dimension_numbers = #tpu.dot_dimension_numbers<[1], [0], [0], [1], [0, 0, 1, 1], [], []>} : vector<8x64xbf16>, vector<64x32xbf16>, vector<8x32xf32> -> vector<8x32xf32>
    %67 = vector.broadcast %7 : vector<1x32xf32> to vector<8x32xf32>
    %68 = arith.addf %66, %67 : vector<8x32xf32>
    %cst_23 = arith.constant 0.000000e+00 : f32
    %69 = vector.broadcast %cst_23 : f32 to vector<8x32xf32>
    %70 = arith.maximumf %68, %69 : vector<8x32xf32>
    %71 = arith.truncf %70 : vector<8x32xf32> to vector<8x32xbf16>
    %c0_24 = arith.constant 0 : index
    %c0_25 = arith.constant 0 : index
    %72 = vector.load %arg6[%c0_24, %c0_25] : memref<32x32xbf16, #tpu.memory_space<vmem>>, vector<32x32xbf16>
    %cst_26 = arith.constant dense<0.000000e+00> : vector<8x32xf32>
    %73 = tpu.matmul %71, %72, %cst_26 {dimension_numbers = #tpu.dot_dimension_numbers<[1], [0], [0], [1], [0, 0, 1, 1], [], []>} : vector<8x32xbf16>, vector<32x32xbf16>, vector<8x32xf32> -> vector<8x32xf32>
    %74 = vector.broadcast %8 : vector<1x32xf32> to vector<8x32xf32>
    %75 = arith.addf %73, %74 : vector<8x32xf32>
    %cst_27 = arith.constant 0.000000e+00 : f32
    %76 = vector.broadcast %cst_27 : f32 to vector<8x32xf32>
    %77 = arith.maximumf %75, %76 : vector<8x32xf32>
    %78 = arith.truncf %77 : vector<8x32xf32> to vector<8x32xbf16>
    %c0_28 = arith.constant 0 : index
    %c0_29 = arith.constant 0 : index
    %79 = vector.load %arg7[%c0_28, %c0_29] : memref<32x128xbf16, #tpu.memory_space<vmem>>, vector<32x128xbf16>
    %cst_30 = arith.constant dense<0.000000e+00> : vector<8x128xf32>
    %80 = tpu.matmul %78, %79, %cst_30 {dimension_numbers = #tpu.dot_dimension_numbers<[1], [0], [0], [1], [0, 0, 1, 1], [], []>} : vector<8x32xbf16>, vector<32x128xbf16>, vector<8x128xf32> -> vector<8x128xf32>
    %81 = vector.broadcast %9 : vector<1x128xf32> to vector<8x128xf32>
    %82 = arith.addf %80, %81 : vector<8x128xf32>
    %c0_31 = arith.constant 0 : index
    %c0_32 = arith.constant 0 : index
    %83 = vector.load %arg2[%c0_31, %c0_32] : memref<8x128xf32, #tpu.memory_space<vmem>>, vector<8x128xf32>
    %84 = arith.addf %82, %83 : vector<8x128xf32>
    %cst_33 = arith.constant 1.000000e+00 : f32
    %85 = vector.broadcast %cst_33 : f32 to vector<8x128xf32>
    %86 = arith.mulf %84, %85 : vector<8x128xf32>
    %cst_34 = arith.constant dense<0xFF800000> : vector<8xf32>
    %87 = vector.multi_reduction <maximumf>, %86, %cst_34 [1] : vector<8x128xf32> to vector<8xf32>
    %88 = vector.shape_cast %87 : vector<8xf32> to vector<8x1xf32>
    %89 = vector.broadcast %88 : vector<8x1xf32> to vector<8x128xf32>
    %90 = arith.subf %86, %89 : vector<8x128xf32>
    %91 = math.exp %90 : vector<8x128xf32>
    %cst_35 = arith.constant dense<0.000000e+00> : vector<8xf32>
    %92 = vector.multi_reduction <add>, %91, %cst_35 [1] : vector<8x128xf32> to vector<8xf32>
    %93 = vector.shape_cast %92 : vector<8xf32> to vector<8x1xf32>
    %94 = vector.broadcast %93 : vector<8x1xf32> to vector<8x128xf32>
    %95 = arith.divf %91, %94 : vector<8x128xf32>
    %c0_36 = arith.constant 0 : index
    %c0_37 = arith.constant 0 : index
    %96 = vector.load %arg9[%c0_36, %c0_37] : memref<8x128xf32, #tpu.memory_space<vmem>>, vector<8x128xf32>
    tpu.vector_store %arg9[%c0_36, %c0_37], %95 {strides = array<i32>} : memref<8x128xf32, #tpu.memory_space<vmem>>, vector<8x128xf32>,
    return
  }
  func.func @transform_0(%arg0: i32) -> (i32, i32) {
    %c0_i32 = arith.constant 0 : i32
    %c0_i32_0 = arith.constant 0 : i32
    return %arg0, %c0_i32 : i32, i32
  }
  func.func @transform_1(%arg0: i32) -> (i32, i32) {
    %c0_i32 = arith.constant 0 : i32
    %c0_i32_0 = arith.constant 0 : i32
    return %arg0, %c0_i32 : i32, i32
  }
  func.func @transform_2(%arg0: i32) -> (i32, i32) {
    %c0_i32 = arith.constant 0 : i32
    %c0_i32_0 = arith.constant 0 : i32
    %c0_i32_1 = arith.constant 0 : i32
    return %c0_i32, %c0_i32_0 : i32, i32
  }
  func.func @transform_3(%arg0: i32) -> (i32, i32) {
    %c0_i32 = arith.constant 0 : i32
    %c0_i32_0 = arith.constant 0 : i32
    %c0_i32_1 = arith.constant 0 : i32
    return %c0_i32, %c0_i32_0 : i32, i32
  }
  func.func @transform_4(%arg0: i32) -> (i32, i32) {
    %c0_i32 = arith.constant 0 : i32
    %c0_i32_0 = arith.constant 0 : i32
    %c0_i32_1 = arith.constant 0 : i32
    return %c0_i32, %c0_i32_0 : i32, i32
  }
  func.func @transform_5(%arg0: i32) -> (i32, i32) {
    %c0_i32 = arith.constant 0 : i32
    %c0_i32_0 = arith.constant 0 : i32
    %c0_i32_1 = arith.constant 0 : i32
    return %c0_i32, %c0_i32_0 : i32, i32
  }
  func.func @transform_6(%arg0: i32) -> (i32, i32) {
    %c0_i32 = arith.constant 0 : i32
    %c0_i32_0 = arith.constant 0 : i32
    %c0_i32_1 = arith.constant 0 : i32
    return %c0_i32, %c0_i32_0 : i32, i32
  }
  func.func @transform_7(%arg0: i32) -> (i32, i32) {
    %c0_i32 = arith.constant 0 : i32
    %c0_i32_0 = arith.constant 0 : i32
    %c0_i32_1 = arith.constant 0 : i32
    return %c0_i32, %c0_i32_0 : i32, i32
  }
  func.func @transform_8(%arg0: i32) -> (i32, i32) {
    %c0_i32 = arith.constant 0 : i32
    %c0_i32_0 = arith.constant 0 : i32
    return %arg0, %c0_i32 : i32, i32
  }
}

</mosaic_0001>

<bundles_post_ra>
// kernel: tpu_custom_call.1
= control target key start
LH: loop header
LB: loop body
LE: loop exit
PB: predicated region body
PF: predicated region fallthrough
CT: control target
= control target key end

     0   :  { %13 = vsyncpa [#allocation3], 0  ;;  %s961_s0 = inlined_call_operand.hbm [shape: bf16[8,32], index: 0, kind: input, shape index: {}]   ;;  %s962_s1 = inlined_call_operand.hbm [shape: f32[8,128], index: 1, kind: input, shape index: {}]   ;;  %s963_s2 = inlined_call_operand.vmem [shape: bf16[32,64], index: 2, kind: input, shape index: {}]   ;;  %s964_s3 = inlined_call_operand.vmem [shape: bf16[64,64], index: 3, kind: input, shape index: {}]   ;;  %s965_s4 = inlined_call_operand.vmem [shape: bf16[64,32], index: 4, kind: input, shape index: {}]   ;;  %s966_s5 = inlined_call_operand.vmem [shape: bf16[32,32], index: 5, kind: input, shape index: {}]   ;;  %s967_s6 = inlined_call_operand.hbm [shape: bf16[32,128], index: 6, kind: input, shape index: {}]   ;;  %s968_s7 = inlined_call_operand.hbm [shape: f32[9,128], index: 7, kind: input, shape index: {}]   ;;  %s969_s8 = inlined_call_operand.hbm [shape: f32[8,128], index: 8, kind: output, shape index: {}]  }
   0x1   :  { %14 = vsyncpa [#allocation6], 0 }
   0x2   :  { %15 = vsyncpa [#allocation9], 0 }
   0x3   :  { %16 = vsyncpa [#allocation4], 0  ;;  %s756_s27 = smov [#allocation5]   ;;  %s757_s29 = smov [#allocation2]  }
   0x4   :  { %s33_s28 = sshll.u32 %s756_s27, 4  ;;  %s23_s30 = sshll.u32 %s757_s29, 4  ;;  %s34_s28 = int_to_ptr.vmem [resolvable:$true] %s33_s28  ;;  %s24_s30 = int_to_ptr.vmem [resolvable:$true] %s23_s30 }
   0x5   :  { %s638_s11 = scalar_lea.hbm %s962_s1, 128 }
   0x6   :  { %p639_p0 = scmp.ne.s32.totalorder %s962_s1, %s638_s11  ;;  %p642_p1 = scmp.lt.u32.totalorder %s638_s11, %s962_s1 }
   0x8   :  { %p644_p2 = pnand %p642_p1, %p639_p0 }
   0xa   :  { %647 = shalt.err (!%p644_p2)
}
   0xb   :  { %s648_s16 = scalar_lea.vmem %s34_s28, 128  ;;  %p653_p4 = scmp.lt.s32.totalorder %s34_s28, %s34_s28 }
   0xc   :  { %p649_p3 = scmp.ne.s32.totalorder %s34_s28, %s648_s16  ;;  %p654_p5 = scmp.lt.s32.totalorder %s648_s16, %s648_s16 }
   0xe   :  { %p655_p6 = por %p654_p5, %p653_p4 }
  0x10   :  { %p656_p7 = pnand %p655_p6, %p649_p3 }
  0x12   :  { %659 = shalt.err (!%p656_p7)
}
  0x13   :  { %36 = dma.hbm_to_vmem [thread:$0]  %s962_s1, 128, %s34_s28, [#allocation6]  }
  0x14   :  { %s660_s21 = scalar_lea.hbm %s961_s0, 64 }
  0x15   :  { %p661_p8 = scmp.ne.s32.totalorder %s961_s0, %s660_s21  ;;  %p664_p9 = scmp.lt.u32.totalorder %s660_s21, %s961_s0 }
  0x17   :  { %p666_p10 = pnand %p664_p9, %p661_p8 }
  0x19   :  { %669 = shalt.err (!%p666_p10)
}
  0x1a   :  { %s670_s26 = scalar_lea.vmem %s24_s30, 64  ;;  %p675_p12 = scmp.lt.s32.totalorder %s24_s30, %s24_s30 }
  0x1b   :  { %p671_p11 = scmp.ne.s32.totalorder %s24_s30, %s670_s26  ;;  %p676_p13 = scmp.lt.s32.totalorder %s670_s26, %s670_s26 }
  0x1d   :  { %p677_p0 = por %p676_p13, %p675_p12 }
  0x1f   :  { %p678_p1 = pnand %p677_p0, %p671_p11 }
  0x21   :  { %681 = shalt.err (!%p678_p1)
}
  0x22   :  { %26 = dma.hbm_to_vmem [thread:$0]  %s961_s0, 64, %s24_s30, [#allocation3]  }
  0x23   :  { %s758_s28 = smov [#allocation7]   ;;  %s682_s11 = scalar_lea.hbm %s967_s6, 256 }
  0x24   :  { %s50_s29 = sshll.u32 %s758_s28, 4  ;;  %p683_p2 = scmp.ne.s32.totalorder %s967_s6, %s682_s11  ;;  %s51_s29 = int_to_ptr.vmem [resolvable:$true] %s50_s29 }
  0x25   :  { %p686_p3 = scmp.lt.u32.totalorder %s682_s11, %s967_s6 }
  0x27   :  { %p688_p4 = pnand %p686_p3, %p683_p2 }
  0x29   :  { %691 = shalt.err (!%p688_p4)
}
  0x2a   :  { %s692_s16 = scalar_lea.vmem %s51_s29, 256  ;;  %p697_p6 = scmp.lt.s32.totalorder %s51_s29, %s51_s29 }
  0x2b   :  { %p693_p5 = scmp.ne.s32.totalorder %s51_s29, %s692_s16  ;;  %p698_p7 = scmp.lt.s32.totalorder %s692_s16, %s692_s16 }
  0x2d   :  { %p699_p8 = por %p698_p7, %p697_p6 }
  0x2f   :  { %p700_p9 = pnand %p699_p8, %p693_p5 }
  0x31   :  { %703 = shalt.err (!%p700_p9)
}
  0x32   :  { %s759_s0 = smov 64   ;;  %s760_s30 = smov 4  }
  0x33   :  { %56 = dma.hbm_to_vmem [thread:$0]  %s967_s6, 256, %s51_s29, [#allocation6], %s759_s0, %s759_s0, %s760_s30  }
  0x34   :  { %s761_s19 = smov [#allocation8]   ;;  %s704_s23 = scalar_lea.hbm %s968_s7, 256 }
  0x35   :  { %s62_s20 = sshll.u32 %s761_s19, 4  ;;  %p705_p10 = scmp.ne.s32.totalorder %s968_s7, %s704_s23  ;;  %s63_s20 = int_to_ptr.vmem [resolvable:$true] %s62_s20 }
  0x36   :  { %p708_p11 = scmp.lt.u32.totalorder %s704_s23, %s968_s7 }
  0x38   :  { %p710_p12 = pnand %p708_p11, %p705_p10 }
  0x3a   :  { %713 = shalt.err (!%p710_p12)
}
  0x3b   :  { %s714_s27 = scalar_lea.vmem %s63_s20, 256  ;;  %p719_p0 = scmp.lt.s32.totalorder %s63_s20, %s63_s20 }
  0x3c   :  { %p715_p13 = scmp.ne.s32.totalorder %s63_s20, %s714_s27  ;;  %p720_p1 = scmp.lt.s32.totalorder %s714_s27, %s714_s27 }
  0x3e   :  { %p721_p2 = por %p720_p1, %p719_p0 }
  0x40   :  { %p722_p3 = pnand %p721_p2, %p715_p13 }
  0x42   :  { %725 = shalt.err (!%p722_p3)
}
  0x43   :  { %s762_s6 = smov 128   ;;  %s763_s28 = smov 8  }
  0x44   :  { %68 = dma.hbm_to_vmem [thread:$0]  %s968_s7, 256, %s63_s20, [#allocation9], %s762_s6, %s762_s6, %s763_s28  }
  0x45   :  { %748 = dma.done.wait [#allocation3], 64  }
  0x46   :  { %749 = vsyncadd [#allocation3], 4294967232 }
  0x47   :  { %750 = dma.done.wait [#allocation6], 384  }
  0x48   :  { %751 = vsyncadd [#allocation6], 4294966912 }
  0x49   :  { %752 = dma.done.wait [#allocation9], 256  }
  0x4a   :  { %753 = vsyncadd [#allocation9], 4294967040  ;;  %v764_v0 = vmov 0.0   ;;  %vm765_vm0 = vmmov 0   ;;  %v616_v1 = vld [vmem:[%s963_s2] sm:$0xff]   ;;  %v617_v2 = vld [vmem:[%s963_s2 + $0x8] sm:$0xff]   ;;  %v89_v4 = vlaneseq }
  0x4b   :  { %557 = vmatprep.subr.bf16.mxu0 %v764_v0  ;;  %561 = vmatprep.mubr.msk.bf16.mxu0 %vm765_vm0, %v764_v0  ;;  %vm105_vm1 = vcmask 261120   ;;  %v84_v3 = vld [vmem:[#allocation2] sm:$0xf]  ;;  %vm149_vm2 = vcmask 523264   ;;  %v619_v21 = vld [vmem:[%s964_s3 + $0x8] sm:$0xff]   ;;  %v620_v22 = vld [vmem:[%s964_s3 + $0x10] sm:$0xff]  }
  0x4c   :  { %565 = vmatprep.subr.bf16.mxu1 %v764_v0  ;;  %573 = vmatprep.mubr.msk.bf16.mxu1 %vm765_vm0, %v764_v0  ;;  %v877_v5 = vshrl.u32 %v89_v4, 7  ;;  %v880_v7 = vld [vmem:[#allocation8] sm:$0xff]  ;;  %v623_v51 = vld [vmem:[%s965_s4 + $0x8] sm:$0xff]   ;;  %v624_v52 = vld [vmem:[%s965_s4 + $0x10] sm:$0xff]  }
  0x4d   :  { %558 = vmatpush3.bf16.msra.mxu0 %v616_v1  ;;  %v618_v20 = vld [vmem:[%s964_s3] sm:$0xff]   ;;  %v621_v23 = vld [vmem:[%s964_s3 + $0x18] sm:$0xff]  }
  0x4e   :  { %559 = vmatprep.subr.bf16.mxu0 %v764_v0  ;;  %v91_v6 = vsub.s32 0, %v877_v5  ;;  %566 = vmatpush3.bf16.msra.mxu1 %v618_v20  ;;  %v166_v27 = vsub.s32 1, %v877_v5  ;;  %v171_v28 = vsub.s32 2, %v877_v5  ;;  %v186_v37 = vsub.s32 3, %v877_v5  ;;  %v622_v50 = vld [vmem:[%s965_s4] sm:$0xff]   ;;  %v625_v53 = vld [vmem:[%s965_s4 + $0x18] sm:$0xff]  }
  0x4f   :  { %567 = vmatprep.subr.bf16.mxu1 %v764_v0  ;;  %v626_v54 = vld [vmem:[%s966_s5] sm:$0xff]   ;;  %v270_v58 = vsub.s32 4, %v877_v5  ;;  %v275_v59 = vsub.s32 5, %v877_v5 }
  0x50   :  { %v92_v8 = vrot.slane %v880_v7, %v91_v6  ;;  %v167_v29 = vrot.slane %v880_v7, %v166_v27  ;;  %v172_v32 = vrot.slane %v880_v7, %v171_v28  ;;  %v187_v38 = vrot.slane %v880_v7, %v186_v37  ;;  %v627_v6 = vld [vmem:[%s966_s5 + $0x8] sm:$0xff]   ;;  %v534_v27 = vld [vmem:[#allocation8 + $0x8] ss:$0 sm:$0xff]  ;;  %s766_s5 = smov [#allocation10]  }
  0x51   :  { %560 = vmatpush3.bf16.msra.mxu0 %v617_v2  ;;  %v271_v60 = vrot.slane %v880_v7, %v270_v58  ;;  %v276_v63 = vrot.slane %v880_v7, %v275_v59  ;;  %s507_s27 = sshll.u32 %s766_s5, 4  ;;  %s508_s27 = int_to_ptr.vmem [resolvable:$true] %s507_s27 }
  0x52   :  { %577 = vmatprep.subr.bf16.mxu0 %v764_v0  ;;  %568 = vmatpush3.bf16.msra.mxu1 %v619_v21  ;;  %s726_s6 = scalar_lea.vmem %s508_s27, 128  ;;  %p731_p5 = scmp.lt.s32.totalorder %s508_s27, %s508_s27 }
  0x53   :  { %569 = vmatprep.subr.bf16.mxu1 %v764_v0  ;;  %p727_p4 = scmp.ne.s32.totalorder %s508_s27, %s726_s6  ;;  %p732_p6 = scmp.lt.s32.totalorder %s726_s6, %s726_s6 }
  0x54   :  { %562 = vmatmul.mubr.msk.bf16.vlgmr.msra.gmra.mrb[0].mxu0 %vm105_vm1, %v84_v3 }
  0x55   :  { %585 = vmatprep.mubr.msk.bf16.mxu0 %vm765_vm0, %v764_v0  ;;  %578 = vmatpush3.bf16.msra.mxu0 %v622_v50  ;;  %p733_p7 = por %p732_p6, %p731_p5 }
  0x56   :  { %570 = vmatpush3.bf16.msra.mxu1 %v620_v22  ;;  %579 = vmatprep.subr.bf16.mxu0 %v764_v0 }
  0x57   :  { %571 = vmatprep.subr.bf16.mxu1 %v764_v0  ;;  %p734_p8 = pnand %p733_p7, %p727_p4 }
  0x59   :  { %580 = vmatpush3.bf16.msra.mxu0 %v623_v51 }
  0x5a   :  { %572 = vmatpush3.bf16.msra.mxu1 %v621_v23  ;;  %581 = vmatprep.subr.bf16.mxu0 %v764_v0 }
  0x5b   :  { %589 = vmatprep.subr.bf16.mxu1 %v764_v0 }
  0x5d   :  { %582 = vmatpush3.bf16.msra.mxu0 %v624_v52 }
  0x5e   :  { %583 = vmatprep.subr.bf16.mxu0 %v764_v0 }
  0x61   :  { %584 = vmatpush3.bf16.msra.mxu0 %v625_v53 }
  0x62   :  { %597 = vmatprep.subr.bf16.mxu0 %v764_v0 }
 0x127   :  { %v143_v9 = vpop.f32.mrb[0].mxu0 }
 0x128   :  { %v144_v10 = vadd.f32 %v143_v9, %v92_v8  ;;  %v563_v11 = vpop.f32.mrb[1].mxu0  ;;  %v628_v8 = vld [vmem:[#allocation7] sm:$0xff]   ;;  %v290_v9 = vsub.s32 6, %v877_v5 }
 0x129   :  { %v146_v12 = vpop.f32.mrb[2].mxu0 }
 0x12a   :  { %v564_v13 = vpop.f32.mrb[3].mxu0  ;;  %v150_v14 = vsel %vm149_vm2, %v144_v10, 0.0 }
 0x12b   :  { %151 = vadd.xlane.f32.xlu0 %v150_v14 }
 0x1b8   :  { %v152_v15 = vpop.xlane.xlu0 %151 }
 0x1b9   :  { %v154_v16 = vmul.f32 0.015625, %v152_v15 }
 0x1bb   :  { %v155_v17 = vsub.f32 %v144_v10, %v154_v16  ;;  %v291_v10 = vrot.slane %v880_v7, %v290_v9 }
 0x1bd   :  { %v156_v18 = vmul.f32 %v155_v17, %v155_v17 }
 0x1bf   :  { %v157_v19 = vsel %vm149_vm2, %v156_v18, 0.0  ;;  %v629_v18 = vld [vmem:[#allocation7 + $0x8] sm:$0xff]  }
 0x1c0   :  { %158 = vadd.xlane.f32.xlu0 %v157_v19  ;;  %v367_v19 = vsub.s32 7, %v877_v5 }
 0x1c2   :  { %v368_v20 = vrot.slane %v880_v7, %v367_v19 }
 0x24d   :  { %v159_v24 = vpop.xlane.xlu0 %158 }
 0x24e   :  { %v160_v25 = vmul.f32 0.015625, %v159_v24 }
 0x250   :  { %v161_v26 = vadd.f32 1e-05, %v160_v25 }
 0x252   :  { %630 = vrsqrt.f32 %v161_v26 }
 0x25c   :  { %v631_v30 = vpop.eup %630 }
 0x25d   :  { %v163_v31 = vmul.f32 %v631_v30, %v155_v17 }
 0x25f   :  { %v168_v33 = vmul.f32 %v167_v29, %v163_v31  ;;  %v489_v29 = vld [vmem:[#allocation5] sm:$0xff] }
 0x261   :  { %v173_v34 = vadd.f32 %v172_v32, %v168_v33 }
 0x263   :  { %v174_v35 = vmax.f32 %v173_v34, 0.0 }
 0x265   :  { %v175_v36 = vpack.c.bf16 %v174_v35, %v174_v35 }
 0x267   :  { %574 = vmatmul.mubr.msk.bf16.vlgmr.msra.gmra.mrb[0].mxu1 %vm149_vm2, %v175_v36 }
 0x268   :  { %593 = vmatprep.mubr.msk.bf16.mxu1 %vm765_vm0, %v764_v0  ;;  %590 = vmatpush3.bf16.msra.mxu1 %v626_v54 }
 0x269   :  { %591 = vmatprep.subr.bf16.mxu1 %v764_v0 }
 0x26c   :  { %592 = vmatpush3.bf16.msra.mxu1 %v627_v6 }
 0x33a   :  { %v249_v39 = vpop.f32.mrb[0].mxu1 }
 0x33b   :  { %v250_v40 = vadd.f32 %v249_v39, %v187_v38  ;;  %v575_v41 = vpop.f32.mrb[1].mxu1 }
 0x33c   :  { %v252_v42 = vpop.f32.mrb[2].mxu1 }
 0x33d   :  { %v576_v43 = vpop.f32.mrb[3].mxu1  ;;  %v255_v44 = vsel %vm149_vm2, %v250_v40, 0.0 }
 0x33e   :  { %256 = vadd.xlane.f32.xlu1 %v255_v44 }
 0x3cb   :  { %v257_v45 = vpop.xlane.xlu1 %256 }
 0x3cc   :  { %v258_v46 = vmul.f32 0.015625, %v257_v45 }
 0x3ce   :  { %v259_v47 = vsub.f32 %v250_v40, %v258_v46 }
 0x3d0   :  { %v260_v48 = vmul.f32 %v259_v47, %v259_v47 }
 0x3d2   :  { %v261_v49 = vsel %vm149_vm2, %v260_v48, 0.0 }
 0x3d3   :  { %262 = vadd.xlane.f32.xlu1 %v261_v49 }
 0x460   :  { %v263_v55 = vpop.xlane.xlu1 %262 }
 0x461   :  { %v264_v56 = vmul.f32 0.015625, %v263_v55 }
 0x463   :  { %v265_v57 = vadd.f32 1e-05, %v264_v56 }
 0x465   :  { %632 = vrsqrt.f32 %v265_v57 }
 0x46f   :  { %v633_v61 = vpop.eup %632 }
 0x470   :  { %v267_v62 = vmul.f32 %v633_v61, %v259_v47 }
 0x472   :  { %v272_v1 = vmul.f32 %v271_v60, %v267_v62 }
 0x474   :  { %v277_v2 = vadd.f32 %v276_v63, %v272_v1 }
 0x476   :  { %v278_v3 = vmax.f32 %v277_v2, 0.0 }
 0x478   :  { %v279_v4 = vpack.c.bf16 %v278_v3, %v278_v3 }
 0x47a   :  { %586 = vmatmul.mubr.msk.bf16.vlgmr.msra.gmra.mrb[4].mxu0 %vm149_vm2, %v279_v4 }
 0x47b   :  { %601 = vmatprep.mubr.msk.bf16.mxu0 %vm765_vm0, %v764_v0  ;;  %598 = vmatpush3.bf16.msra.mxu0 %v628_v8 }
 0x47c   :  { %599 = vmatprep.subr.bf16.mxu0 %v764_v0 }
 0x47f   :  { %600 = vmatpush3.bf16.msra.mxu0 %v629_v18 }
 0x54d   :  { %v353_v11 = vpop.f32.mrb[4].mxu0 }
 0x54e   :  { %v354_v12 = vadd.f32 %v353_v11, %v291_v10  ;;  %v587_v13 = vpop.f32.mrb[5].mxu0 }
 0x54f   :  { %v356_v14 = vpop.f32.mrb[6].mxu0 }
 0x550   :  { %v359_v15 = vmax.f32 %v354_v12, 0.0  ;;  %v588_v16 = vpop.f32.mrb[7].mxu0 }
 0x552   :  { %v360_v17 = vpack.c.bf16 %v359_v15, %v359_v15 }
 0x554   :  { %594 = vmatmul.mubr.msk.bf16.vlgmr.msra.gmra.mrb[4].mxu1 %vm105_vm1, %v360_v17 }
 0x627   :  { %v418_v0 = vpop.f32.mrb[4].mxu1 }
 0x628   :  { %v419_v21 = vadd.f32 %v418_v0, %v368_v20  ;;  %v595_v22 = vpop.f32.mrb[5].mxu1 }
 0x629   :  { %v421_v23 = vpop.f32.mrb[6].mxu1 }
 0x62a   :  { %v424_v24 = vmax.f32 %v419_v21, 0.0  ;;  %v596_v25 = vpop.f32.mrb[7].mxu1 }
 0x62c   :  { %v425_v26 = vpack.c.bf16 %v424_v24, %v424_v24 }
 0x62e   :  { %602 = vmatmul.mubr.msk.bf16.vlgmr.msra.gmra.mrb[8].mxu0 %vm105_vm1, %v425_v26 }
 0x701   :  { %v483_v28 = vpop.f32.mrb[8].mxu0 }
 0x702   :  { %v484_v30 = vadd.f32 %v534_v27, %v483_v28  ;;  %v603_v31 = vpop.f32.mrb[9].mxu0 }
 0x703   :  { %v486_v32 = vpop.f32.mrb[10].mxu0 }
 0x704   :  { %v604_v33 = vpop.f32.mrb[11].mxu0  ;;  %v490_v34 = vadd.f32 %v489_v29, %v484_v30 }
 0x706   :  { %491 = vmax.xlane.f32.xlu0 %v490_v34 }
 0x793   :  { %v492_v5 = vpop.xlane.xlu0 %491 }
 0x794   :  { %v493_v7 = vsub.f32 %v490_v34, %v492_v5 }
 0x796   :  { %v494_v35 = vmul.f32 1.442695, %v493_v7 }
 0x798   :  { %634 = vpow2.f32 %v494_v35 }
 0x7a2   :  { %v635_v36 = vpop.eup %634 }
 0x7a3   :  { %496 = vadd.xlane.f32.xlu1 %v635_v36 }
 0x830   :  { %v497_v37 = vpop.xlane.xlu1 %496 }
 0x831   :  { %636 = vrcp.f32 %v497_v37 }
 0x83b   :  { %v637_v38 = vpop.eup %636 }
 0x83c   :  { %v499_v39 = vmul.f32 %v637_v38, %v635_v36 }
 0x83e   :  { %500 = vst [vmem:[#allocation10] sm:$0xff] %v499_v39 }
 0x83f   :  { %737 = shalt.err (!%p734_p8)
}
 0x840   :  { %s738_s9 = scalar_lea.hbm %s969_s8, 128 }
 0x841   :  { %p739_p9 = scmp.ne.s32.totalorder %s969_s8, %s738_s9  ;;  %p742_p10 = scmp.lt.u32.totalorder %s738_s9, %s969_s8 }
 0x843   :  { %p744_p11 = pnand %p742_p10, %p739_p9 }
 0x845   :  { %747 = shalt.err (!%p744_p11)
}
 0x846   :  { %510 = dma.vmem_to_hbm [thread:$0]  %s508_s27, 128, %s969_s8, [#allocation4]  }
 0x847   :  { %754 = dma.done.wait [#allocation4], 128  }
 0x848   :  { %755 = vsyncadd [#allocation4], 4294967168 }
 0x849   :  { %514 = vsyncpa [#allocation3], 1 }
 0x84a   :  { %515 = vsyncpa [#allocation6], 1 }
 0x84b   :  { %516 = vsyncpa [#allocation9], 1 }
 0x84c   :  { %517 = vsyncpa [#allocation4], 1 }

</bundles_post_ra>
